<compile_context>
chip_gen: v7x
topology: tpu7x:2x2x1
jax: 0.10.0
libtpu: 0.0.40
codegen_flags: <defaults>
</compile_context>

<pallas_src>
import jax
import jax.numpy as jnp
from jax import lax
from jax.experimental import pallas as pl
from jax.experimental.pallas import tpu as pltpu


def _spatial_gather_kernel(scale, hw_total, t_hw):
    """Online-softmax spatial gather over HW tiles."""
    has_pad = (hw_total % t_hw) != 0

    def kernel(probs_ref, feat_ref, out_ref, m_sc, l_sc, acc_sc):
        # probs_ref: (1, K, tHW)   feat_ref: (1, C, tHW)   out_ref: (1, K, C)
        s = pl.program_id(1)

        @pl.when(s == 0)
        def _init():
            m_sc[...] = jnp.full_like(m_sc, -jnp.inf)
            l_sc[...] = jnp.zeros_like(l_sc)
            acc_sc[...] = jnp.zeros_like(acc_sc)

        # Logits for this spatial tile; softmax math in f32.
        p = probs_ref[0].astype(jnp.float32) * scale           # (K, tHW)
        if has_pad:
            # Only the last HW tile is partial; mask padded columns out.
            col = s * t_hw + lax.broadcasted_iota(jnp.int32, p.shape, 1)
            p = jnp.where(col < hw_total, p, -jnp.inf)

        m_prev = m_sc[...]                                     # (K, 1)
        m_new = jnp.maximum(m_prev, jnp.max(p, axis=-1, keepdims=True))
        alpha = jnp.exp(m_prev - m_new)                        # (K, 1)
        e = jnp.exp(p - m_new)                                 # (K, tHW)

        l_sc[...] = alpha * l_sc[...] + jnp.sum(e, axis=-1, keepdims=True)

        f = feat_ref[0]                                        # (C, tHW), native dtype
        # ctx_partial[k, c] = sum_hw e[k, hw] * f[c, hw]   (MXU, f32 accumulate,
        # contraction over the shared last dim -> no transpose of f).
        part = lax.dot_general(
            e.astype(f.dtype), f,
            dimension_numbers=(((1,), (1,)), ((), ())),
            preferred_element_type=jnp.float32)                # (K, C)
        acc_sc[...] = alpha * acc_sc[...] + part
        m_sc[...] = m_new

        @pl.when(s == pl.num_programs(1) - 1)
        def _finalize():
            # EUP approximate reciprocal + one Newton step (negligible, tiny array).
            r = pl.reciprocal(l_sc[...], approx=True)
            inv_l = r * (2.0 - l_sc[...] * r)
            out_ref[0] = (acc_sc[...] * inv_l).astype(out_ref.dtype)

    return kernel


def spatial_gather(features, probs, scale=1.0, block_hw=2048):
    """features: (B, C, H, W), probs: (B, K, H, W) -> (B, C, K, 1)."""
    B, C, H, W = features.shape
    Bp, K, Hp, Wp = probs.shape
    assert (B, H, W) == (Bp, Hp, Wp)
    HW = H * W

    feats_flat = features.reshape(B, C, HW)
    probs_flat = probs.reshape(B, K, HW)

    # Spatial tile: full HW when small, otherwise a lane-aligned (x128) chunk.
    if HW <= block_hw:
        t_hw = HW
    else:
        t_hw = max((block_hw // 128) * 128, 128)
    pad = (-HW) % t_hw
    if pad:
        probs_flat = jnp.pad(probs_flat, ((0, 0), (0, 0), (0, pad)))
        feats_flat = jnp.pad(feats_flat, ((0, 0), (0, 0), (0, pad)))
    hw_padded = HW + pad
    num_hw = hw_padded // t_hw

    # Scoped-VMEM budget: double-buffered input/output tiles + f32 scratch + headroom.
    p_bytes = K * t_hw * jnp.dtype(probs_flat.dtype).itemsize
    f_bytes = C * t_hw * jnp.dtype(feats_flat.dtype).itemsize
    o_bytes = K * C * jnp.dtype(features.dtype).itemsize
    acc_bytes = (K * C + 2 * K * 128) * 4
    vmem_limit = int(2 * (p_bytes + f_bytes + o_bytes) + acc_bytes + (8 << 20))
    vmem_limit = max(vmem_limit, 32 << 20)

    # NOTE: batch axis is "parallel" (megacore-shards on v7x). For B==1
    # deployments on v7x one could instead split the HW axis across cores with
    # per-core partial (K,C) accumulators; not needed here.
    out = pl.pallas_call(
        _spatial_gather_kernel(scale, HW, t_hw),
        out_shape=jax.ShapeDtypeStruct((B, K, C), features.dtype),
        grid_spec=pltpu.PrefetchScalarGridSpec(
            num_scalar_prefetch=0,
            grid=(B, num_hw),
            in_specs=[
                pl.BlockSpec((1, K, t_hw), lambda b, s: (b, 0, s)),
                pl.BlockSpec((1, C, t_hw), lambda b, s: (b, 0, s)),
            ],
            out_specs=pl.BlockSpec((1, K, C), lambda b, s: (b, 0, 0)),
            scratch_shapes=[
                pltpu.VMEM((K, 1), jnp.float32),   # running max
                pltpu.VMEM((K, 1), jnp.float32),   # running sum
                pltpu.VMEM((K, C), jnp.float32),   # context accumulator
            ],
        ),
        compiler_params=pltpu.CompilerParams(
            dimension_semantics=("parallel", "arbitrary"),
            vmem_limit_bytes=vmem_limit,
        ),
    )(probs_flat, feats_flat)

    # (B, K, C) -> (B, C, K, 1): cheap wrapper glue, keeps kernel store lane-dense.
    return jnp.transpose(out, (0, 2, 1))[..., None]


def _reference(features, probs, scale=1.0):
    B, C, H, W = features.shape
    K = probs.shape[1]
    p = probs.reshape(B, K, -1)
    f = features.reshape(B, C, -1).transpose(0, 2, 1)  # (B, HW, C)
    p = jax.nn.softmax(scale * p, axis=2)
    ctx = jnp.einsum("bks,bsc->bkc", p, f)
    return jnp.transpose(ctx, (0, 2, 1))[..., None]


if __name__ == "__main__":
    key = jax.random.PRNGKey(0)
    k1, k2 = jax.random.split(key)

    B, C, K, H, W = 2, 4, 8, 16, 16
    features = jax.random.normal(k1, (B, C, H, W), dtype=jnp.float32)
    probs = jax.random.normal(k2, (B, K, H, W), dtype=jnp.float32)

    # block_hw=128 -> HW=256 splits into 2 spatial tiles, exercising the
    # online-softmax accumulation path even at these small test shapes.
    out = spatial_gather(features, probs, scale=1.0, block_hw=128)
    out = jax.block_until_ready(out)

    ref = _reference(features, probs, scale=1.0)
    assert out.shape == (B, C, K, 1), out.shape
    assert jnp.allclose(out, ref, atol=1e-4, rtol=1e-4), "mismatch vs reference"

    print("KERNEL_OK")
</pallas_src>

<mosaic_0001>
module attributes {stable_mosaic.version = 11 : i64} {
  func.func @kernel(%arg0: i32, %arg1: i32, %arg2: memref<1x8x128xf32, #tpu.memory_space<vmem>>, %arg3: memref<1x4x128xf32, #tpu.memory_space<vmem>>, %arg4: memref<1x8x4xf32, #tpu.memory_space<vmem>>, %arg5: memref<8x1xf32, #tpu.memory_space<vmem>>, %arg6: memref<8x1xf32, #tpu.memory_space<vmem>>, %arg7: memref<8x4xf32, #tpu.memory_space<vmem>>) attributes {dimension_semantics = [#tpu.dimension_semantics<parallel>, #tpu.dimension_semantics<arbitrary>], iteration_bounds = array<i64: 2, 2>, scalar_prefetch = 0 : i64, scratch_operands = 3 : i64, tpu.core_type = #tpu.core_type<tc>, window_params = [{transform_indices = @transform_0, window_bounds = array<i64: 1, 8, 128>}, {transform_indices = @transform_1, window_bounds = array<i64: 1, 4, 128>}, {transform_indices = @transform_2, window_bounds = array<i64: 1, 8, 4>}]} {
    %c0_i32 = arith.constant 0 : i32
    %0 = arith.cmpi eq, %arg1, %c0_i32 : i32
    %1 = arith.extui %0 : i1 to i32
    %c0_i32_0 = arith.constant 0 : i32
    %2 = arith.cmpi ne, %1, %c0_i32_0 : i32
    scf.if %2 {
      %cst_22 = arith.constant 0xFF800000 : f32
      %34 = vector.broadcast %cst_22 : f32 to vector<8x1xf32>
      %c0_23 = arith.constant 0 : index
      %c0_24 = arith.constant 0 : index
      %35 = vector.load %arg5[%c0_23, %c0_24] : memref<8x1xf32, #tpu.memory_space<vmem>>, vector<8x1xf32>
      tpu.vector_store %arg5[%c0_23, %c0_24], %34 {strides = array<i32>} : memref<8x1xf32, #tpu.memory_space<vmem>>, vector<8x1xf32>,
      %cst_25 = arith.constant 0.000000e+00 : f32
      %36 = vector.broadcast %cst_25 : f32 to vector<8x1xf32>
      %c0_26 = arith.constant 0 : index
      %c0_27 = arith.constant 0 : index
      %37 = vector.load %arg6[%c0_26, %c0_27] : memref<8x1xf32, #tpu.memory_space<vmem>>, vector<8x1xf32>
      tpu.vector_store %arg6[%c0_26, %c0_27], %36 {strides = array<i32>} : memref<8x1xf32, #tpu.memory_space<vmem>>, vector<8x1xf32>,
      %cst_28 = arith.constant 0.000000e+00 : f32
      %38 = vector.broadcast %cst_28 : f32 to vector<8x4xf32>
      %c0_29 = arith.constant 0 : index
      %c0_30 = arith.constant 0 : index
      %39 = vector.load %arg7[%c0_29, %c0_30] : memref<8x4xf32, #tpu.memory_space<vmem>>, vector<8x4xf32>
      tpu.vector_store %arg7[%c0_29, %c0_30], %38 {strides = array<i32>} : memref<8x4xf32, #tpu.memory_space<vmem>>, vector<8x4xf32>,
    } else {
    }
    %c0 = arith.constant 0 : index
    %c0_1 = arith.constant 0 : index
    %c0_2 = arith.constant 0 : index
    %3 = vector.load %arg2[%c0, %c0_1, %c0_2] : memref<1x8x128xf32, #tpu.memory_space<vmem>>, vector<1x8x128xf32>
    %4 = vector.shape_cast %3 : vector<1x8x128xf32> to vector<8x128xf32>
    %cst = arith.constant 1.000000e+00 : f32
    %5 = vector.broadcast %cst : f32 to vector<8x128xf32>
    %6 = arith.mulf %4, %5 : vector<8x128xf32>
    %c0_3 = arith.constant 0 : index
    %c0_4 = arith.constant 0 : index
    %7 = vector.load %arg5[%c0_3, %c0_4] : memref<8x1xf32, #tpu.memory_space<vmem>>, vector<8x1xf32>
    %cst_5 = arith.constant dense<0xFF800000> : vector<8xf32>
    %8 = vector.multi_reduction <maximumf>, %6, %cst_5 [1] : vector<8x128xf32> to vector<8xf32>
    %9 = vector.shape_cast %8 : vector<8xf32> to vector<8x1xf32>
    %10 = arith.maximumf %7, %9 : vector<8x1xf32>
    %11 = arith.subf %7, %10 : vector<8x1xf32>
    %12 = math.exp %11 : vector<8x1xf32>
    %13 = vector.broadcast %10 : vector<8x1xf32> to vector<8x128xf32>
    %14 = arith.subf %6, %13 : vector<8x128xf32>
    %15 = math.exp %14 : vector<8x128xf32>
    %c0_6 = arith.constant 0 : index
    %c0_7 = arith.constant 0 : index
    %16 = vector.load %arg6[%c0_6, %c0_7] : memref<8x1xf32, #tpu.memory_space<vmem>>, vector<8x1xf32>
    %17 = arith.mulf %12, %16 : vector<8x1xf32>
    %cst_8 = arith.constant dense<0.000000e+00> : vector<8xf32>
    %18 = vector.multi_reduction <add>, %15, %cst_8 [1] : vector<8x128xf32> to vector<8xf32>
    %19 = vector.shape_cast %18 : vector<8xf32> to vector<8x1xf32>
    %20 = arith.addf %17, %19 : vector<8x1xf32>
    %c0_9 = arith.constant 0 : index
    %c0_10 = arith.constant 0 : index
    %21 = vector.load %arg6[%c0_9, %c0_10] : memref<8x1xf32, #tpu.memory_space<vmem>>, vector<8x1xf32>
    tpu.vector_store %arg6[%c0_9, %c0_10], %20 {strides = array<i32>} : memref<8x1xf32, #tpu.memory_space<vmem>>, vector<8x1xf32>,
    %c0_11 = arith.constant 0 : index
    %c0_12 = arith.constant 0 : index
    %c0_13 = arith.constant 0 : index
    %22 = vector.load %arg3[%c0_11, %c0_12, %c0_13] : memref<1x4x128xf32, #tpu.memory_space<vmem>>, vector<1x4x128xf32>
    %23 = vector.shape_cast %22 : vector<1x4x128xf32> to vector<4x128xf32>
    %cst_14 = arith.constant dense<0.000000e+00> : vector<8x4xf32>
    %24 = tpu.matmul %15, %23, %cst_14 {dimension_numbers = #tpu.dot_dimension_numbers<[1], [1], [0], [0], [0, 0, 1, 0], [], []>} : vector<8x128xf32>, vector<4x128xf32>, vector<8x4xf32> -> vector<8x4xf32>
    %c0_15 = arith.constant 0 : index
    %c0_16 = arith.constant 0 : index
    %25 = vector.load %arg7[%c0_15, %c0_16] : memref<8x4xf32, #tpu.memory_space<vmem>>, vector<8x4xf32>
    %26 = vector.broadcast %12 : vector<8x1xf32> to vector<8x4xf32>
    %27 = arith.mulf %26, %25 : vector<8x4xf32>
    %28 = arith.addf %27, %24 : vector<8x4xf32>
    %c0_17 = arith.constant 0 : index
    %c0_18 = arith.constant 0 : index
    %29 = vector.load %arg7[%c0_17, %c0_18] : memref<8x4xf32, #tpu.memory_space<vmem>>, vector<8x4xf32>
    tpu.vector_store %arg7[%c0_17, %c0_18], %28 {strides = array<i32>} : memref<8x4xf32, #tpu.memory_space<vmem>>, vector<8x4xf32>,
    %c0_19 = arith.constant 0 : index
    %c0_20 = arith.constant 0 : index
    %30 = vector.load %arg5[%c0_19, %c0_20] : memref<8x1xf32, #tpu.memory_space<vmem>>, vector<8x1xf32>
    tpu.vector_store %arg5[%c0_19, %c0_20], %10 {strides = array<i32>} : memref<8x1xf32, #tpu.memory_space<vmem>>, vector<8x1xf32>,
    %c1_i32 = arith.constant 1 : i32
    %31 = arith.cmpi eq, %arg1, %c1_i32 : i32
    %32 = arith.extui %31 : i1 to i32
    %c0_i32_21 = arith.constant 0 : i32
    %33 = arith.cmpi ne, %32, %c0_i32_21 : i32
    scf.if %33 {
      %c0_22 = arith.constant 0 : index
      %c0_23 = arith.constant 0 : index
      %34 = vector.load %arg6[%c0_22, %c0_23] : memref<8x1xf32, #tpu.memory_space<vmem>>, vector<8x1xf32>
      %35 = tpu.reciprocal %34 {approx = true} : vector<8x1xf32> -> vector<8x1xf32>
      %c0_24 = arith.constant 0 : index
      %c0_25 = arith.constant 0 : index
      %36 = vector.load %arg6[%c0_24, %c0_25] : memref<8x1xf32, #tpu.memory_space<vmem>>, vector<8x1xf32>
      %37 = arith.mulf %36, %35 : vector<8x1xf32>
      %cst_26 = arith.constant 2.000000e+00 : f32
      %38 = vector.broadcast %cst_26 : f32 to vector<8x1xf32>
      %39 = arith.subf %38, %37 : vector<8x1xf32>
      %40 = arith.mulf %35, %39 : vector<8x1xf32>
      %c0_27 = arith.constant 0 : index
      %c0_28 = arith.constant 0 : index
      %41 = vector.load %arg7[%c0_27, %c0_28] : memref<8x4xf32, #tpu.memory_space<vmem>>, vector<8x4xf32>
      %42 = vector.broadcast %40 : vector<8x1xf32> to vector<8x4xf32>
      %43 = arith.mulf %41, %42 : vector<8x4xf32>
      %c0_29 = arith.constant 0 : index
      %c0_30 = arith.constant 0 : index
      %c0_31 = arith.constant 0 : index
      %44 = vector.load %arg4[%c0_29, %c0_30, %c0_31] : memref<1x8x4xf32, #tpu.memory_space<vmem>>, vector<1x8x4xf32>
      %45 = vector.shape_cast %44 : vector<1x8x4xf32> to vector<8x4xf32>
      %46 = vector.shape_cast %43 : vector<8x4xf32> to vector<1x8x4xf32>
      tpu.vector_store %arg4[%c0_29, %c0_30, %c0_31], %46 {strides = array<i32>} : memref<1x8x4xf32, #tpu.memory_space<vmem>>, vector<1x8x4xf32>,
    } else {
    }
    return
  }
  func.func @transform_0(%arg0: i32, %arg1: i32) -> (i32, i32, i32) {
    %c0_i32 = arith.constant 0 : i32
    %c0_i32_0 = arith.constant 0 : i32
    return %arg0, %c0_i32, %arg1 : i32, i32, i32
  }
  func.func @transform_1(%arg0: i32, %arg1: i32) -> (i32, i32, i32) {
    %c0_i32 = arith.constant 0 : i32
    %c0_i32_0 = arith.constant 0 : i32
    return %arg0, %c0_i32, %arg1 : i32, i32, i32
  }
  func.func @transform_2(%arg0: i32, %arg1: i32) -> (i32, i32, i32) {
    %c0_i32 = arith.constant 0 : i32
    %c0_i32_0 = arith.constant 0 : i32
    %c0_i32_1 = arith.constant 0 : i32
    return %arg0, %c0_i32, %c0_i32_0 : i32, i32, i32
  }
}

</mosaic_0001>

<bundles_post_ra>
// kernel: tpu_custom_call.1
= control target key start
LH: loop header
LB: loop body
LE: loop exit
PB: predicated region body
PF: predicated region fallthrough
CT: control target
= control target key end

     0   :  { %7 = vsyncpa [#allocation6], 0  ;;  %s926_s0 = inlined_call_operand.hbm [shape: f32[2,8,256], index: 0, kind: input, shape index: {}]   ;;  %s927_s1 = inlined_call_operand.hbm [shape: f32[2,4,256], index: 1, kind: input, shape index: {}]   ;;  %s928_s2 = inlined_call_operand.vmem [shape: f32[2,8,4], index: 2, kind: output, shape index: {}]  }
   0x1   :  { %9 = vsyncpa [#allocation6 + $0x1], 0 }
   0x2   :  { %10 = vsyncpa [#allocation8], 0 }
   0x3   :  { %12 = vsyncpa [#allocation8 + $0x1], 0  ;;  %s721_s9 = smov 0   ;;  %s723_s10 = smov 0  }
   0x4   :  { %s725_s11 = smov 0   ;;  %s727_s12 = smov 0  }
   0x5   :  { %s729_s13 = smov 0   ;;  %s731_s14 = smov 0  }
   0x6   :  { %s733_s15 = smov 0   ;;  %s735_s16 = smov 0  }
   0x7 LB: > { %s450_s17 = sadd.s32 4294967295, %s696_s16   ;;  %s27_s18 = sadd.s32 1, %s688_s14  ;;  %s696_s16 = sphi %s735_s16, %s18_s16   ;;  %s692_s15 = sphi %s733_s15, %s944_s15   ;;  %s688_s14 = sphi %s731_s14, %s943_s14   ;;  %s684_s13 = sphi %s729_s13, %s942_s13   ;;  %s680_s12 = sphi %s727_s12, %s941_s12   ;;  %s676_s11 = sphi %s725_s11, %s940_s11   ;;  %s672_s10 = sphi %s723_s10, %s939_s10   ;;  %s668_s9 = sphi %s721_s9, %s938_s9  }
   0x8   : > { %p28_p0 = scmp.ge.s32.totalorder %s27_s18, 2  ;;  %s30_s19 = sadd.s32 1, %s692_s15 }
   0x9   : > { %s39_s20 = sadd.s32 1, %s676_s11  ;;  %p46_p1 = scmp.ne.s32.totalorder %s676_s11, %s672_s10 }
   0xa   : > { %s946_s18 = smov (%p28_p0, %s27_s18), 0  ;;  %s948_s19 = smov (!%p28_p0, %s30_s19), %s692_s15 }
   0xb   : > { %s35_s21 = ssub.s32 %s688_s14, %s946_s18  ;;  %p47_p2 = scmp.eq.s32.totalorder %s696_s16, 0 }
   0xc   : > { %p32_p3 = scmp.ge.s32.totalorder %s948_s19, 2  ;;  %p52_p4 = scmp.ne.s32.totalorder %s672_s10, %s668_s9 }
   0xd   : > { %p772_p5 = por %p47_p2, %p46_p1  ;;  %p53_p6 = scmp.eq.s32.totalorder %s450_s17, 0 }
   0xe   : > { %s950_s19 = smov (%p32_p3, %s948_s19), 0  ;;  %p486_p8 = scmp.lt.s32.totalorder %s696_s16, 4 }
   0xf   : > { %p778_p7 = por %p53_p6, %p52_p4  ;;  %s34_s24 = ssub.s32 %s692_s15, %s950_s19 }
  0x10   : > { %s36_s25 = sor.u32 %s35_s21, %s34_s24  ;;  %s786_s26 = sand.u32 1, %s676_s11  }
  0x11   : > { %s931_s23 = scalar_select %p778_p7, 1, 0 }
  0x12   : > { %p37_p9 = scmp.eq.s32.totalorder %s36_s25, 0  ;;  %s454_s27 = sshll.u32 %s786_s26, 3 }
  0x13   : > { %s455_s28 = sshll.u32 %s692_s15, 1  ;;  %s134_s4 = scalar_lea.vmem [#allocation5], %s454_s27 }
  0x14   : > { %s791_s29 = scalar_select %p37_p9, %s676_s11, %s39_s20  }
  0x15   : > { %s794_s30 = sadd.s32 %s688_s14, %s455_s28  ;;  %s143_s5 = sshll.u32 %s134_s4, 4  ;;  %s802_s5 = int_to_ptr.vmem [resolvable:$true] %s143_s5 }
  0x16   : > { %s456_s3 = sshll.u32 %s794_s30, 7  ;;  %p808_p10 = pnand %p486_p8, %p772_p5 }
  0x17   : > { %s800_s8 = scalar_lea.hbm %s926_s0, %s456_s3  ;;  %s457_s17 = sshll.u32 %s786_s26, 2 }
  0x18   : > { %s131_s20 = scalar_lea.sflag [#allocation6], %s786_s26  ;;  %s566_s21 = scalar_lea.hbm %s800_s8, 128 }
  0x19   : > { %p567_p13 = scmp.ne.s32.totalorder %s800_s8, %s566_s21  ;;  %p568_p0 = pneg %p808_p10 }
  0x1a   : > { %s571_s25 = scalar_lea.hbm %s926_s0, 512  ;;  %p572_p3 = scmp.lt.u32.totalorder %s800_s8, %s926_s0 }
  0x1b   : > { %p569_p1 = pnand %p568_p0, %p567_p13  ;;  %p573_p4 = scmp.lt.u32.totalorder %s571_s25, %s566_s21 }
  0x1c   : > { %p575_p6 = scmp.lt.u32.totalorder %s566_s21, %s800_s8 }
  0x1d   : > { %p570_p2 = pneg %p569_p1  ;;  %p574_p5 = por %p573_p4, %p572_p3 }
  0x1f   : > { %p576_p8 = por %p575_p6, %p574_p5 }
  0x21   : > { %p577_p9 = pnand %p576_p8, %p570_p2 }
  0x23   : > { %580 = shalt.err (!%p577_p9)
}
  0x24   : > { %s581_s3 = scalar_lea.vmem %s802_s5, 128  ;;  %s698_s4 = smov [#allocation5]  }
  0x25   : > { %p582_p13 = scmp.ne.s32.totalorder %s802_s5, %s581_s3  ;;  %s586_s6 = sshll.u32 %s698_s4, 4  ;;  %s587_s6 = int_to_ptr.vmem [resolvable:$false] %s586_s6 }
  0x26   : > { %s588_s7 = scalar_lea.vmem %s587_s6, 256  ;;  %p589_p12 = scmp.lt.s32.totalorder %s802_s5, %s587_s6 }
  0x27   : > { %p584_p1 = pnand %p582_p13, %p568_p0  ;;  %p590_p3 = scmp.lt.s32.totalorder %s588_s7, %s581_s3 }
  0x29   : > { %p585_p11 = pneg %p584_p1  ;;  %p591_p4 = por %p590_p3, %p589_p12 }
  0x2b   : > { %p592_p5 = pnand %p591_p4, %p585_p11 }
  0x2d   : > { %595 = shalt.err (!%p592_p5)
}
  0x2e   : > { %482 = dma.hbm_to_vmem [thread:$0]  (!%p808_p10), %s800_s8, 128, %s802_s5, %s131_s20  }
  0x2f   : > { %p933_p2 = scmp.lt.s32.totalorder %s696_s16, 5  ;;  %p934_p6 = scmp.ge.s32.totalorder %s696_s16, 1 }
  0x30   : > { %s459_s22 = sshll.u32 %s794_s30, 6  ;;  %s154_s24 = scalar_lea.vmem [#allocation7], %s457_s17 }
  0x31   : > { %p845_p8 = pnand %p934_p6, %p933_p2  ;;  %s163_s25 = sshll.u32 %s154_s24, 4  ;;  %s164_s25 = int_to_ptr.vmem [resolvable:$true] %s163_s25 }
  0x32   : > { %s855_s3 = scalar_lea.hbm %s927_s1, %s459_s22  ;;  %s151_s5 = scalar_lea.sflag [#allocation8], %s786_s26 }
  0x33   : > { %s935_s21 = scalar_select %p845_p8, 1, 0 }
  0x34   : > { %s596_s8 = scalar_lea.hbm %s855_s3, 64  ;;  %s601_s20 = scalar_lea.hbm %s927_s1, 256 }
  0x35   : > { %p597_p11 = scmp.ne.s32.totalorder %s855_s3, %s596_s8  ;;  %p602_p13 = scmp.lt.u32.totalorder %s855_s3, %s927_s1 }
  0x36   : > { %p603_p1 = scmp.lt.u32.totalorder %s601_s20, %s596_s8  ;;  %p605_p4 = scmp.lt.u32.totalorder %s596_s8, %s855_s3 }
  0x37   : > { %p599_p12 = pnand %p597_p11, %p568_p0 }
  0x38   : > { %p604_p3 = por %p603_p1, %p602_p13 }
  0x39   : > { %p600_p9 = pneg %p599_p12 }
  0x3a   : > { %p606_p5 = por %p605_p4, %p604_p3 }
  0x3c   : > { %p607_p2 = pnand %p606_p5, %p600_p9 }
  0x3e   : > { %610 = shalt.err (!%p607_p2)
}
  0x3f   : > { %s611_s26 = scalar_lea.vmem %s164_s25, 64  ;;  %s699_s7 = smov [#allocation7]  }
  0x40   : > { %p612_p6 = scmp.ne.s32.totalorder %s164_s25, %s611_s26  ;;  %s616_s22 = sshll.u32 %s699_s7, 4  ;;  %s617_s22 = int_to_ptr.vmem [resolvable:$false] %s616_s22 }
  0x41   : > { %s618_s24 = scalar_lea.vmem %s617_s22, 128  ;;  %p619_p7 = scmp.lt.s32.totalorder %s164_s25, %s617_s22 }
  0x42   : > { %p614_p11 = pnand %p612_p6, %p568_p0  ;;  %p620_p8 = scmp.lt.s32.totalorder %s618_s24, %s611_s26 }
  0x44   : > { %p615_p12 = pneg %p614_p11  ;;  %p621_p1 = por %p620_p8, %p619_p7 }
  0x46   : > { %p622_p13 = pnand %p621_p1, %p615_p12 }
  0x48   : > { %625 = shalt.err (!%p622_p13)
}
  0x49   : > { %485 = dma.hbm_to_vmem [thread:$0]  (!%p808_p10), %s855_s3, 64, %s164_s25, %s151_s5  }
  0x4a   : > { %p936_p9 = scmp.ne.s32.totalorder %s935_s21, 0 }
  0x4b   : > { %s174_s27 = sand.u32 (!%p936_p9), 1, %s672_s10   ;;  %p937_p0 = scmp.ne.s32.totalorder (!%p936_p9), %s931_s23, 0 }
  0x4c   : > { %172 = sbr.rel (%p936_p9) target bundleno = 684 (0x2ac), region = 28  ;;  %s461_s28 = sshll.u32 (!%p936_p9), %s174_s27, 3 }
  0x4d   : > { %s175_s8 = scalar_lea.sflag (!%p936_p9), [#allocation6], %s174_s27  ;;  %s178_s30 = scalar_lea.vmem (!%p936_p9), [#allocation5], %s461_s28 }
  0x53   : > { %659 = dma.done.wait (%p937_p0), %s175_s8, 128  }
  0x54   : > { %661 = vsyncadd (%p937_p0), %s175_s8, 4294967168  ;;  %s462_s17 = sshll.u32 %s174_s27, 2  ;;  %s184_s20 = scalar_lea.sflag [#allocation8], %s174_s27 }
  0x55   : > { %s187_s9 = scalar_lea.vmem [#allocation7], %s462_s17 }
  0x56   : > { %663 = dma.done.wait (%p937_p0), %s184_s20, 64  }
  0x57   : > { %665 = vsyncadd (%p937_p0), %s184_s20, 4294967232  ;;  %p212_p7 = scmp.lt.s32.totalorder %s684_s13, 1  ;;  %p464_p10 = scmp.ne.s32.totalorder %s680_s12, 0 }
  0x58   : > { %vm220_vm0 = vcmask (!%p464_p10), 7168   ;;  %vm223_vm1 = vcmask (!%p464_p10), 31744   ;;  %v700_v0 = vmov (!%p464_p10), -inf   ;;  %v701_v1 = vmov (!%p464_p10), 0.0  }
  0x59   : > { %s952_s13 = smov (!%p212_p7, %s684_s13), 1  ;;  %219 = sbr.rel (%p464_p10) target bundleno = 96 (0x60), region = 40 }
  0x5a   : > { %s463_s21 = sshll.u32 %s952_s13, 3  ;;  %221 = vst.msk [vmem:[#allocation2] sm:$0xff] (!%p464_p10), %vm220_vm0, %v700_v0  ;;  %222 = vst.msk [vmem:[#allocation3] sm:$0xff] (!%p464_p10), %vm220_vm0, %v701_v1 }
  0x5b   : > { %s893_s5 = scalar_lea.vmem %s928_s2, %s463_s21  ;;  %224 = vst.msk [vmem:[#allocation4] sm:$0xff] (!%p464_p10), %vm223_vm1, %v701_v1 }
  0x60 PF: > { %v225_v2 = vld [vmem:[%s178_s30] sm:$0xff]  ;;  %v702_v3 = vmov 0   ;;  %vm246_vm2 = vcmask 7168   ;;  %v248_v8 = vld [vmem:[%s187_s9] sm:$0xf]  ;;  %v703_v9 = vmov 0.0  }
  0x61   : > { %227 = vmax.xlane.f32.xlu0 %v225_v2  ;;  %558 = vset.pattern.permute.xlu1 %v702_v3  ;;  %v226_v4 = vld [vmem:[#allocation2] sm:$0xff]  ;;  %vm704_vm3 = vmmov 0   ;;  %v241_v16 = vld [vmem:[#allocation3] sm:$0xff]  ;;  %vm327_vm4 = vcmask 31744   ;;  %p465_p8 = scmp.ne.s32.totalorder %s680_s12, 1 }
  0x62   : > { %557 = vset.pattern.permute.xlu0 %v702_v3  ;;  %470 = vmatprep.subr.mxu0 %v703_v9  ;;  %v319_v20 = vld [vmem:[#allocation4] sm:$0xff]  ;;  %v705_v27 = vmov (!%p465_p8), 0  }
  0x63   : > { %472 = vmatprep.mubr.msk.f32.mxu0 %vm704_vm3, %v703_v9  ;;  %471 = vmatpush3.xpose.msra.mxu0 %v248_v8 }
  0xee   : > { %v228_v5 = vpop.xlane.xlu0 %227 }
  0xef   : > { %v229_v6 = vmax.f32 %v226_v4, %v228_v5 }
  0xf1   : > { %v230_v7 = vsub.f32 %v226_v4, %v229_v6  ;;  %329 = vst.msk [vmem:[#allocation2] sm:$0xff] %vm246_vm2, %v229_v6  ;;  %235 = vperm.xlu0 %557, %v229_v6  }
  0xf3   : > { %v231_v14 = vmul.f32 1.442695, %v230_v7 }
  0xf5   : > { %563 = vset.pattern.permute.xlu0 (!%p465_p8), %v705_v27 }
 0x170   : > { %v236_v10 = vpop.permute.xlu0 %235 }
 0x171   : > { %v238_v11 = vsub.f32 %v225_v2, %v236_v10 }
 0x173   : > { %v239_v12 = vmul.f32 1.442695, %v238_v11 }
 0x175   : > { %559 = vpow2.f32 %v239_v12 }
 0x176   : > { %561 = vpow2.f32 %v231_v14 }
 0x17f   : > { %v560_v13 = vpop.eup %559 }
 0x180   : > { %243 = vadd.xlane.f32.xlu1 %v560_v13  ;;  %473 = vmatmul.mubr.f32.vlgmr.msra.gmra.mrb[0].mxu0 %v560_v13  ;;  %v562_v15 = vpop.eup %561 }
 0x181   : > { %v242_v17 = vmul.f32 %v562_v15, %v241_v16 }
 0x191   : > { %322 = vperm.xlu1 %558, %v562_v15  }
 0x20d   : > { %v244_v18 = vpop.xlane.xlu1 %243 }
 0x20e   : > { %v245_v19 = vadd.f32 %v244_v18, %v242_v17 }
 0x210   : > { %247 = vst.msk [vmem:[#allocation3] sm:$0xff] %vm246_vm2, %v245_v19 }
 0x211   : > { %v323_v21 = vpop.permute.xlu1 %322 }
 0x212   : > { %v325_v22 = vmul.f32 %v323_v21, %v319_v20 }
 0x217   : > { %v334_v26 = vld [vmem:[#allocation3] sm:$0xff] (!%p465_p8) }
 0x218   : > { %564 = vrcp.f32 (!%p465_p8), %v334_v26 }
 0x222   : > { %v565_v28 = vpop.eup (!%p465_p8), %564 }
 0x223   : > { %v336_v29 = vmul.f32 (!%p465_p8), %v565_v28, %v334_v26 }
 0x225   : > { %v337_v30 = vsub.f32 (!%p465_p8), 2.0, %v336_v29 }
 0x227   : > { %v338_v31 = vmul.f32 (!%p465_p8), %v565_v28, %v337_v30 }
 0x229   : > { %342 = vperm.xlu0 (!%p465_p8), %563, %v338_v31  }
 0x250   : > { %333 = sbr.rel (%p465_p8) target bundleno = 684 (0x2ac), region = 44 }
 0x253   : > { %v315_v23 = vpop.f32.mrb[0].mxu0 }
 0x254   : > { %v326_v24 = vadd.f32 %v325_v22, %v315_v23  ;;  %v474_v25 = vpop.f32.mrb[1].mxu0 }
 0x256   : > { %328 = vst.msk [vmem:[#allocation4] sm:$0xff] %vm327_vm4, %v326_v24 }
 0x25d   : > { %v339_v32 = vld [vmem:[#allocation4] sm:$0xff] }
 0x2a8   : > { %v343_v33 = vpop.permute.xlu0 %342 }
 0x2a9   : > { %v345_v34 = vmul.f32 %v343_v33, %v339_v32 }
 0x2ab   : > { %346 = vst.msk [vmem:[%s893_s5] sm:$0xff] %vm327_vm4, %v345_v34 }
 0x2ac PF: > { %s18_s16 = sadd.s32 1, %s696_s16   ;;  %s938_s9 = smov %s672_s10 }
 0x2ad   : > { %p15_p3 = scmp.ge.s32.totalorder %s18_s16, 6   ;;  %s939_s10 = smov %s676_s11 }
 0x2ae   : > { %s940_s11 = smov %s791_s29  ;;  %s941_s12 = smov %s688_s14 }
 0x2af   : > { %s942_s13 = smov %s692_s15  ;;  %s943_s14 = smov %s946_s18 }
 0x2b0   : > { %s944_s15 = smov %s950_s19  ;;  %17 = sbr.rel (!%p15_p3) target bundleno = 7 (0x7), region = 89 }
 0x2b7   :  { %366 = vsyncpa [#allocation6], 1 }
 0x2b8   :  { %368 = vsyncpa [#allocation6 + $0x1], 1 }
 0x2b9   :  { %369 = vsyncpa [#allocation8], 1 }
 0x2ba   :  { %371 = vsyncpa [#allocation8 + $0x1], 1 }

</bundles_post_ra>
